<compile_context>
chip_gen: v7x
topology: tpu7x:2x2x1
jax: 0.10.0
libtpu: 0.0.40
codegen_flags: <defaults>
</compile_context>

<pallas_src>
import functools

import jax
import jax.numpy as jnp
from jax.experimental import pallas as pl
from jax.experimental.pallas import tpu as pltpu


def _round_up(a, b):
    return (a + b - 1) // b * b


# ----------------------------- kernels ------------------------------------ #

def _conv_stats_kernel(p_ref, w_ref, stats_ref):
    """Pass 1: conv tile (im2col matmul, MXU) -> per-tile BN partial stats only.

    p_ref:     (TILE_M, K_PAD)  bf16 patches tile
    w_ref:     (K_PAD, C_PAD)   bf16 weights (resident: same block every step)
    stats_ref: (1, 8, C_PAD)    f32 partials (row0 = sum, row1 = sumsq, rest 0)
    """
    y = jnp.dot(p_ref[...], w_ref[...], preferred_element_type=jnp.float32)
    s1 = jnp.sum(y, axis=0, keepdims=True)            # (1, C_PAD)
    s2 = jnp.sum(y * y, axis=0, keepdims=True)        # (1, C_PAD)
    pad = jnp.zeros((6, y.shape[1]), jnp.float32)     # fill the 8-sublane tile
    stats_ref[...] = jnp.concatenate([s1, s2, pad], axis=0)[None]


def _conv_bn_relu_kernel(p_ref, w_ref, scale_ref, shift_ref, o_ref):
    """Pass 2: recompute conv tile + fused folded-BN affine + ReLU.

    p_ref:     (TILE_M, K_PAD)  bf16 patches tile
    w_ref:     (K_PAD, C_PAD)   bf16 weights
    scale_ref: (1, C_PAD)       f32  gamma * rsqrt(var + eps)
    shift_ref: (1, C_PAD)       f32  beta - mean * scale
    o_ref:     (TILE_M, C_PAD)  f32 output tile (lane-dense, unmasked stores)
    """
    y = jnp.dot(p_ref[...], w_ref[...], preferred_element_type=jnp.float32)
    out = y * scale_ref[...] + shift_ref[...]          # broadcast (1, C_PAD)
    o_ref[...] = jnp.maximum(out, 0.0).astype(o_ref.dtype)


# ----------------------------- wrapper ------------------------------------ #

def _im2col(x_nchw, K):
    """x: (N, C, H, W) -> patches (N*Ho*Wo, C*K*K), stride=1, padding=0."""
    N, C, H, W = x_nchw.shape
    Ho, Wo = H - K + 1, W - K + 1
    cols = []
    for i in range(K):
        for j in range(K):
            cols.append(x_nchw[:, :, i:i + Ho, j:j + Wo])   # (N, C, Ho, Wo)
    patches = jnp.stack(cols, axis=2)                       # (N, C, K*K, Ho, Wo)
    patches = patches.transpose(0, 3, 4, 1, 2)              # (N, Ho, Wo, C, K*K)
    return patches.reshape(N * Ho * Wo, C * K * K), (N, Ho, Wo)


def conv2d_bn_relu(x, weight, bias, gamma, beta, kernel_size=3,
                   tile_m=512, eps=1e-5):
    """Forward pass of the PyTorch Conv2D block (stride=1, padding=0).

    x:      (N, C_in, H, W)  NCHW
    weight: (C_out, C_in, K, K)
    bias:   (C_out,)   -- unused inside the kernel: it cancels exactly under
                          training-mode BatchNorm (kept for API compatibility).
    gamma:  (C_out,)   BN weight
    beta:   (C_out,)   BN bias
    returns (N, C_out, H-K+1, W-K+1) NCHW, float32
    """
    del bias  # cancels under training-mode BN (mean subtraction removes it)

    K = kernel_size
    C_out = weight.shape[0]

    patches, (N, Ho, Wo) = _im2col(x.astype(jnp.float32), K)
    M, Kdim = patches.shape

    # Lane-dense / aligned padding.  Don't over-pad tiny problems.
    tile_m = min(tile_m, _round_up(M, 128))
    K_PAD = _round_up(Kdim, 128)
    C_PAD = _round_up(C_out, 128)
    M_PAD = _round_up(M, tile_m)
    num_tiles = M_PAD // tile_m

    # bf16 MXU inputs (f32 accumulation in-kernel).  Zero padding is exact:
    # padded rows / taps produce y == 0 and contribute nothing to sum/sumsq.
    patches_p = jnp.zeros((M_PAD, K_PAD), jnp.bfloat16)
    patches_p = patches_p.at[:M, :Kdim].set(patches.astype(jnp.bfloat16))
    w_p = jnp.zeros((K_PAD, C_PAD), jnp.bfloat16)
    w_p = w_p.at[:Kdim, :C_out].set(
        weight.reshape(C_out, Kdim).T.astype(jnp.bfloat16))

    # ---- pass 1: per-tile BN partial stats (no conv output written) --------
    stats = pl.pallas_call(
        _conv_stats_kernel,
        grid=(num_tiles,),
        in_specs=[
            pl.BlockSpec((tile_m, K_PAD), lambda i: (i, 0)),
            pl.BlockSpec((K_PAD, C_PAD), lambda i: (0, 0)),
        ],
        out_specs=pl.BlockSpec((1, 8, C_PAD), lambda i: (i, 0, 0)),
        out_shape=jax.ShapeDtypeStruct((num_tiles, 8, C_PAD), jnp.float32),
        compiler_params=pltpu.CompilerParams(
            dimension_semantics=("parallel",)),
    )(patches_p, w_p)

    # ---- tiny global combine of partial stats (plain JAX, f32) -------------
    s1 = jnp.sum(stats[:, 0, :], axis=0)                 # (C_PAD,)
    s2 = jnp.sum(stats[:, 1, :], axis=0)                 # (C_PAD,)
    mean = s1 / float(M)                                  # biased batch stats
    var = jnp.maximum(s2 / float(M) - mean * mean, 0.0)
    inv_std = jax.lax.rsqrt(var + eps)

    gamma_p = jnp.zeros((C_PAD,), jnp.float32).at[:C_out].set(
        gamma.astype(jnp.float32))
    beta_p = jnp.zeros((C_PAD,), jnp.float32).at[:C_out].set(
        beta.astype(jnp.float32))
    scale = (gamma_p * inv_std).reshape(1, C_PAD)
    shift = (beta_p - mean * gamma_p * inv_std).reshape(1, C_PAD)

    # ---- pass 2: recompute conv tile + fused normalize + ReLU --------------
    out_flat = pl.pallas_call(
        _conv_bn_relu_kernel,
        grid=(num_tiles,),
        in_specs=[
            pl.BlockSpec((tile_m, K_PAD), lambda i: (i, 0)),
            pl.BlockSpec((K_PAD, C_PAD), lambda i: (0, 0)),
            pl.BlockSpec((1, C_PAD), lambda i: (0, 0)),
            pl.BlockSpec((1, C_PAD), lambda i: (0, 0)),
        ],
        out_specs=pl.BlockSpec((tile_m, C_PAD), lambda i: (i, 0)),
        out_shape=jax.ShapeDtypeStruct((M_PAD, C_PAD), jnp.float32),
        compiler_params=pltpu.CompilerParams(
            dimension_semantics=("parallel",)),
    )(patches_p, w_p, scale, shift)

    # Strip padding, back to NCHW to match the PyTorch module's layout.
    out = out_flat[:M, :C_out].reshape(N, Ho, Wo, C_out)
    return out.transpose(0, 3, 1, 2)


# ------------------------------ test -------------------------------------- #

if __name__ == "__main__":
    # Small shapes consistent with the module: N=2, C_in=4, H=W=16, C_out=8, K=3.
    N, C_in, H, W = 2, 4, 16, 16
    C_out, K = 8, 3

    key = jax.random.PRNGKey(0)
    kx, kw, kb = jax.random.split(key, 3)

    x = jax.random.normal(kx, (N, C_in, H, W), dtype=jnp.float32)

    # Deterministic parameter init (mimics Conv2d's uniform fan-in scale).
    fan_in = C_in * K * K
    bound = 1.0 / (fan_in ** 0.5)
    weight = jax.random.uniform(kw, (C_out, C_in, K, K), minval=-bound,
                                maxval=bound, dtype=jnp.float32)
    bias = jax.random.uniform(kb, (C_out,), minval=-bound, maxval=bound,
                              dtype=jnp.float32)
    gamma = jnp.ones((C_out,), dtype=jnp.float32)   # BatchNorm2d default weight
    beta = jnp.zeros((C_out,), dtype=jnp.float32)   # BatchNorm2d default bias

    fwd = jax.jit(functools.partial(conv2d_bn_relu, kernel_size=K))
    out = fwd(x, weight, bias, gamma, beta)
    jax.block_until_ready(out)

    # Pure-JAX f32 reference (conv + bias + training-mode BN + ReLU).
    ref_conv = jax.lax.conv_general_dilated(
        x, weight, window_strides=(1, 1), padding="VALID",
        dimension_numbers=("NCHW", "OIHW", "NCHW")) + bias.reshape(1, C_out, 1, 1)
    m = jnp.mean(ref_conv, axis=(0, 2, 3), keepdims=True)
    v = jnp.mean((ref_conv - m) ** 2, axis=(0, 2, 3), keepdims=True)
    ref = jnp.maximum((ref_conv - m) * jax.lax.rsqrt(v + 1e-5)
                      * gamma.reshape(1, C_out, 1, 1)
                      + beta.reshape(1, C_out, 1, 1), 0.0)

    assert out.shape == (N, C_out, H - K + 1, W - K + 1)
    # bf16 MXU inputs (f32 accumulation / f32 BN stats) -> relaxed tolerance.
    assert jnp.allclose(out, ref, atol=5e-2, rtol=5e-2), (
        float(jnp.max(jnp.abs(out - ref))))

    print("KERNEL_OK")
</pallas_src>

<mosaic_0001>
module attributes {stable_mosaic.version = 11 : i64} {
  func.func @_conv_stats_kernel(%arg0: i32, %arg1: memref<512x128xbf16, #tpu.memory_space<vmem>>, %arg2: memref<128x128xbf16, #tpu.memory_space<vmem>>, %arg3: memref<1x8x128xf32, #tpu.memory_space<vmem>>) attributes {dimension_semantics = [#tpu.dimension_semantics<parallel>], iteration_bounds = array<i64: 1>, scalar_prefetch = 0 : i64, scratch_operands = 0 : i64, tpu.core_type = #tpu.core_type<tc>, window_params = [{transform_indices = @transform_0, window_bounds = array<i64: 512, 128>}, {pipeline_mode = #tpu.pipeline_mode<synchronous>, transform_indices = @transform_1, window_bounds = array<i64: 128, 128>}, {transform_indices = @transform_2, window_bounds = array<i64: 1, 8, 128>}]} {
    %c0 = arith.constant 0 : index
    %c0_0 = arith.constant 0 : index
    %0 = vector.load %arg1[%c0, %c0_0] : memref<512x128xbf16, #tpu.memory_space<vmem>>, vector<512x128xbf16>
    %c0_1 = arith.constant 0 : index
    %c0_2 = arith.constant 0 : index
    %1 = vector.load %arg2[%c0_1, %c0_2] : memref<128x128xbf16, #tpu.memory_space<vmem>>, vector<128x128xbf16>
    %cst = arith.constant dense<0.000000e+00> : vector<512x128xf32>
    %2 = tpu.matmul %0, %1, %cst {dimension_numbers = #tpu.dot_dimension_numbers<[1], [0], [0], [1], [0, 0, 1, 1], [], []>} : vector<512x128xbf16>, vector<128x128xbf16>, vector<512x128xf32> -> vector<512x128xf32>
    %cst_3 = arith.constant dense<0.000000e+00> : vector<128xf32>
    %3 = vector.multi_reduction <add>, %2, %cst_3 [0] : vector<512x128xf32> to vector<128xf32>
    %4 = vector.shape_cast %3 : vector<128xf32> to vector<1x128xf32>
    %5 = arith.mulf %2, %2 : vector<512x128xf32>
    %cst_4 = arith.constant dense<0.000000e+00> : vector<128xf32>
    %6 = vector.multi_reduction <add>, %5, %cst_4 [0] : vector<512x128xf32> to vector<128xf32>
    %7 = vector.shape_cast %6 : vector<128xf32> to vector<1x128xf32>
    %cst_5 = arith.constant 0.000000e+00 : f32
    %8 = vector.broadcast %cst_5 : f32 to vector<6x128xf32>
    %9 = tpu.concatenate %4, %7, %8 in 0 : vector<1x128xf32>, vector<1x128xf32>, vector<6x128xf32> -> vector<8x128xf32>
    %10 = vector.shape_cast %9 : vector<8x128xf32> to vector<1x8x128xf32>
    %c0_6 = arith.constant 0 : index
    %c0_7 = arith.constant 0 : index
    %c0_8 = arith.constant 0 : index
    %11 = vector.load %arg3[%c0_6, %c0_7, %c0_8] : memref<1x8x128xf32, #tpu.memory_space<vmem>>, vector<1x8x128xf32>
    tpu.vector_store %arg3[%c0_6, %c0_7, %c0_8], %10 {strides = array<i32>} : memref<1x8x128xf32, #tpu.memory_space<vmem>>, vector<1x8x128xf32>,
    return
  }
  func.func @transform_0(%arg0: i32) -> (i32, i32) {
    %c0_i32 = arith.constant 0 : i32
    %c0_i32_0 = arith.constant 0 : i32
    return %arg0, %c0_i32 : i32, i32
  }
  func.func @transform_1(%arg0: i32) -> (i32, i32) {
    %c0_i32 = arith.constant 0 : i32
    %c0_i32_0 = arith.constant 0 : i32
    %c0_i32_1 = arith.constant 0 : i32
    return %c0_i32, %c0_i32_0 : i32, i32
  }
  func.func @transform_2(%arg0: i32) -> (i32, i32, i32) {
    %c0_i32 = arith.constant 0 : i32
    %c0_i32_0 = arith.constant 0 : i32
    %c0_i32_1 = arith.constant 0 : i32
    return %arg0, %c0_i32, %c0_i32_0 : i32, i32, i32
  }
}

module attributes {stable_mosaic.version = 11 : i64} {
  func.func @_conv_bn_relu_kernel(%arg0: i32, %arg1: memref<512x128xbf16, #tpu.memory_space<vmem>>, %arg2: memref<128x128xbf16, #tpu.memory_space<vmem>>, %arg3: memref<1x128xf32, #tpu.memory_space<vmem>>, %arg4: memref<1x128xf32, #tpu.memory_space<vmem>>, %arg5: memref<512x128xf32, #tpu.memory_space<vmem>>) attributes {dimension_semantics = [#tpu.dimension_semantics<parallel>], iteration_bounds = array<i64: 1>, scalar_prefetch = 0 : i64, scratch_operands = 0 : i64, tpu.core_type = #tpu.core_type<tc>, window_params = [{transform_indices = @transform_0, window_bounds = array<i64: 512, 128>}, {pipeline_mode = #tpu.pipeline_mode<synchronous>, transform_indices = @transform_1, window_bounds = array<i64: 128, 128>}, {pipeline_mode = #tpu.pipeline_mode<synchronous>, transform_indices = @transform_2, window_bounds = array<i64: 1, 128>}, {pipeline_mode = #tpu.pipeline_mode<synchronous>, transform_indices = @transform_3, window_bounds = array<i64: 1, 128>}, {transform_indices = @transform_4, window_bounds = array<i64: 512, 128>}]} {
    %c0 = arith.constant 0 : index
    %c0_0 = arith.constant 0 : index
    %0 = vector.load %arg1[%c0, %c0_0] : memref<512x128xbf16, #tpu.memory_space<vmem>>, vector<512x128xbf16>
    %c0_1 = arith.constant 0 : index
    %c0_2 = arith.constant 0 : index
    %1 = vector.load %arg2[%c0_1, %c0_2] : memref<128x128xbf16, #tpu.memory_space<vmem>>, vector<128x128xbf16>
    %cst = arith.constant dense<0.000000e+00> : vector<512x128xf32>
    %2 = tpu.matmul %0, %1, %cst {dimension_numbers = #tpu.dot_dimension_numbers<[1], [0], [0], [1], [0, 0, 1, 1], [], []>} : vector<512x128xbf16>, vector<128x128xbf16>, vector<512x128xf32> -> vector<512x128xf32>
    %c0_3 = arith.constant 0 : index
    %c0_4 = arith.constant 0 : index
    %3 = vector.load %arg3[%c0_3, %c0_4] : memref<1x128xf32, #tpu.memory_space<vmem>>, vector<1x128xf32>
    %4 = vector.broadcast %3 : vector<1x128xf32> to vector<512x128xf32>
    %5 = arith.mulf %2, %4 : vector<512x128xf32>
    %c0_5 = arith.constant 0 : index
    %c0_6 = arith.constant 0 : index
    %6 = vector.load %arg4[%c0_5, %c0_6] : memref<1x128xf32, #tpu.memory_space<vmem>>, vector<1x128xf32>
    %7 = vector.broadcast %6 : vector<1x128xf32> to vector<512x128xf32>
    %8 = arith.addf %5, %7 : vector<512x128xf32>
    %cst_7 = arith.constant 0.000000e+00 : f32
    %9 = vector.broadcast %cst_7 : f32 to vector<512x128xf32>
    %10 = arith.maximumf %8, %9 : vector<512x128xf32>
    %c0_8 = arith.constant 0 : index
    %c0_9 = arith.constant 0 : index
    %11 = vector.load %arg5[%c0_8, %c0_9] : memref<512x128xf32, #tpu.memory_space<vmem>>, vector<512x128xf32>
    tpu.vector_store %arg5[%c0_8, %c0_9], %10 {strides = array<i32>} : memref<512x128xf32, #tpu.memory_space<vmem>>, vector<512x128xf32>,
    return
  }
  func.func @transform_0(%arg0: i32) -> (i32, i32) {
    %c0_i32 = arith.constant 0 : i32
    %c0_i32_0 = arith.constant 0 : i32
    return %arg0, %c0_i32 : i32, i32
  }
  func.func @transform_1(%arg0: i32) -> (i32, i32) {
    %c0_i32 = arith.constant 0 : i32
    %c0_i32_0 = arith.constant 0 : i32
    %c0_i32_1 = arith.constant 0 : i32
    return %c0_i32, %c0_i32_0 : i32, i32
  }
  func.func @transform_2(%arg0: i32) -> (i32, i32) {
    %c0_i32 = arith.constant 0 : i32
    %c0_i32_0 = arith.constant 0 : i32
    %c0_i32_1 = arith.constant 0 : i32
    return %c0_i32, %c0_i32_0 : i32, i32
  }
  func.func @transform_3(%arg0: i32) -> (i32, i32) {
    %c0_i32 = arith.constant 0 : i32
    %c0_i32_0 = arith.constant 0 : i32
    %c0_i32_1 = arith.constant 0 : i32
    return %c0_i32, %c0_i32_0 : i32, i32
  }
  func.func @transform_4(%arg0: i32) -> (i32, i32) {
    %c0_i32 = arith.constant 0 : i32
    %c0_i32_0 = arith.constant 0 : i32
    return %arg0, %c0_i32 : i32, i32
  }
}

</mosaic_0001>

<bundles_post_ra>
// kernel: conv2d_bn_relu.2
= control target key start
LH: loop header
LB: loop body
LE: loop exit
PB: predicated region body
PF: predicated region fallthrough
CT: control target
= control target key end

     0   :  { %vm823_vm0 = vcmask 1040384   ;;  %vm825_vm1 = vcmask 1041408   ;;  %s1346_s1 = inlined_call_operand.vmem [shape: bf16[128,128], index: 1, kind: input, shape index: {}]   ;;  %s1347_s0 = inlined_call_operand.vmem [shape: bf16[512,128], index: 0, kind: input, shape index: {}]   ;;  %s1348_s2 = inlined_call_operand.vmem [shape: f32[1,8,128], index: 2, kind: output, shape index: {}]  }
   0x1   :  { %v1008_v0 = vld [vmem:[%s1346_s1] sm:$0xff]   ;;  %v1009_v1 = vld [vmem:[%s1346_s1 + $0x8] sm:$0xff]   ;;  %v1010_v2 = vld [vmem:[%s1346_s1 + $0x10] sm:$0xff]  }
   0x2   :  { %912 = vmatprep.subr.bf16.mxu0 %v1008_v0  ;;  %992 = vmatprep.subr.bf16.mxu1 %v1008_v0  ;;  %v1011_v3 = vld [vmem:[%s1346_s1 + $0x18] sm:$0xff]   ;;  %v1016_v4 = vld [vmem:[%s1347_s0] sm:$0xff]   ;;  %v1013_v6 = vld [vmem:[%s1346_s1 + $0x28] sm:$0xff]  }
   0x3   :  { %913 = vmatpush3.bf16.msra.mxu0 %v1008_v0  ;;  %1000 = vmatpush3.bf16.msra.mxu1 %v1008_v0  ;;  %v1012_v5 = vld [vmem:[%s1346_s1 + $0x20] sm:$0xff]   ;;  %v1014_v7 = vld [vmem:[%s1346_s1 + $0x30] sm:$0xff]   ;;  %v1015_v8 = vld [vmem:[%s1346_s1 + $0x38] sm:$0xff]  }
   0x4   :  { %914 = vmatprep.subr.bf16.mxu0 %v1009_v1  ;;  %993 = vmatprep.subr.bf16.mxu1 %v1009_v1  ;;  %v1032_v9 = vld [vmem:[%s1347_s0 + $0x80] sm:$0xff]   ;;  %v1017_v10 = vld [vmem:[%s1347_s0 + $0x8] sm:$0xff]   ;;  %v1018_v11 = vld [vmem:[%s1347_s0 + $0x10] sm:$0xff]  }
   0x5   :  { %928 = vmatprep.mubr.bf16.mxu0 %v1016_v4  ;;  %960 = vmatprep.mubr.bf16.mxu1 %v1032_v9  ;;  %v1033_v12 = vld [vmem:[%s1347_s0 + $0x88] sm:$0xff]   ;;  %v1034_v13 = vld [vmem:[%s1347_s0 + $0x90] sm:$0xff]   ;;  %v1019_v14 = vld [vmem:[%s1347_s0 + $0x18] sm:$0xff]  }
   0x6   :  { %v1020_v15 = vld [vmem:[%s1347_s0 + $0x20] sm:$0xff]   ;;  %v1035_v16 = vld [vmem:[%s1347_s0 + $0x98] sm:$0xff]   ;;  %v1021_v18 = vld [vmem:[%s1347_s0 + $0x28] sm:$0xff]  }
   0x7   :  { %915 = vmatpush3.bf16.msra.mxu0 %v1009_v1  ;;  %1001 = vmatpush3.bf16.msra.mxu1 %v1009_v1  ;;  %v1036_v17 = vld [vmem:[%s1347_s0 + $0xa0] sm:$0xff]   ;;  %v1037_v19 = vld [vmem:[%s1347_s0 + $0xa8] sm:$0xff]   ;;  %v1022_v20 = vld [vmem:[%s1347_s0 + $0x30] sm:$0xff]  }
   0x8   :  { %916 = vmatprep.subr.bf16.mxu0 %v1010_v2  ;;  %994 = vmatprep.subr.bf16.mxu1 %v1010_v2  ;;  %v1038_v21 = vld [vmem:[%s1347_s0 + $0xb0] sm:$0xff]   ;;  %v1023_v22 = vld [vmem:[%s1347_s0 + $0x38] sm:$0xff]   ;;  %v1024_v24 = vld [vmem:[%s1347_s0 + $0x40] sm:$0xff]  }
   0x9   :  { %v1039_v23 = vld [vmem:[%s1347_s0 + $0xb8] sm:$0xff]   ;;  %v1040_v25 = vld [vmem:[%s1347_s0 + $0xc0] sm:$0xff]   ;;  %v1025_v26 = vld [vmem:[%s1347_s0 + $0x48] sm:$0xff]  }
   0xa   :  { %v1041_v27 = vld [vmem:[%s1347_s0 + $0xc8] sm:$0xff]   ;;  %v1026_v28 = vld [vmem:[%s1347_s0 + $0x50] sm:$0xff]   ;;  %v1027_v30 = vld [vmem:[%s1347_s0 + $0x58] sm:$0xff]  }
   0xb   :  { %917 = vmatpush3.bf16.msra.mxu0 %v1010_v2  ;;  %1002 = vmatpush3.bf16.msra.mxu1 %v1010_v2  ;;  %v1042_v29 = vld [vmem:[%s1347_s0 + $0xd0] sm:$0xff]   ;;  %v1043_v31 = vld [vmem:[%s1347_s0 + $0xd8] sm:$0xff]   ;;  %v1028_v32 = vld [vmem:[%s1347_s0 + $0x60] sm:$0xff]  }
   0xc   :  { %918 = vmatprep.subr.bf16.mxu0 %v1011_v3  ;;  %995 = vmatprep.subr.bf16.mxu1 %v1011_v3  ;;  %v1044_v33 = vld [vmem:[%s1347_s0 + $0xe0] sm:$0xff]   ;;  %v1029_v34 = vld [vmem:[%s1347_s0 + $0x68] sm:$0xff]   ;;  %v1030_v36 = vld [vmem:[%s1347_s0 + $0x70] sm:$0xff]  }
   0xd   :  { %v1045_v35 = vld [vmem:[%s1347_s0 + $0xe8] sm:$0xff]   ;;  %v1046_v37 = vld [vmem:[%s1347_s0 + $0xf0] sm:$0xff]   ;;  %v1031_v38 = vld [vmem:[%s1347_s0 + $0x78] sm:$0xff]  }
   0xe   :  { %v1047_v39 = vld [vmem:[%s1347_s0 + $0xf8] sm:$0xff]  }
   0xf   :  { %919 = vmatpush3.bf16.msra.mxu0 %v1011_v3  ;;  %1003 = vmatpush3.bf16.msra.mxu1 %v1011_v3 }
  0x10   :  { %920 = vmatprep.subr.bf16.mxu0 %v1012_v5  ;;  %996 = vmatprep.subr.bf16.mxu1 %v1012_v5 }
  0x13   :  { %921 = vmatpush3.bf16.msra.mxu0 %v1012_v5  ;;  %1004 = vmatpush3.bf16.msra.mxu1 %v1012_v5 }
  0x14   :  { %922 = vmatprep.subr.bf16.mxu0 %v1013_v6  ;;  %997 = vmatprep.subr.bf16.mxu1 %v1013_v6 }
  0x17   :  { %923 = vmatpush3.bf16.msra.mxu0 %v1013_v6  ;;  %1005 = vmatpush3.bf16.msra.mxu1 %v1013_v6 }
  0x18   :  { %924 = vmatprep.subr.bf16.mxu0 %v1014_v7  ;;  %998 = vmatprep.subr.bf16.mxu1 %v1014_v7 }
  0x1b   :  { %925 = vmatpush3.bf16.msra.mxu0 %v1014_v7  ;;  %1006 = vmatpush3.bf16.msra.mxu1 %v1014_v7 }
  0x1c   :  { %926 = vmatprep.subr.bf16.mxu0 %v1015_v8  ;;  %999 = vmatprep.subr.bf16.mxu1 %v1015_v8 }
  0x1f   :  { %927 = vmatpush3.bf16.msra.mxu0 %v1015_v8  ;;  %1007 = vmatpush3.bf16.msra.mxu1 %v1015_v8 }
  0x22   :  { %929 = vmatmul.mubr.bf16.vlgmr.msra.gmra.mrb[0].mxu0 %v1017_v10  ;;  %961 = vmatmul.mubr.bf16.vlgmr.msra.gmra.mrb[0].mxu1 %v1033_v12 }
  0x23   :  { %932 = vmatprep.mubr.bf16.mxu0 %v1018_v11  ;;  %964 = vmatprep.mubr.bf16.mxu1 %v1034_v13 }
  0x2a   :  { %933 = vmatmul.mubr.bf16.gmra.mrb[4].mxu0 %v1019_v14  ;;  %965 = vmatmul.mubr.bf16.gmra.mrb[4].mxu1 %v1035_v16 }
  0x2b   :  { %936 = vmatprep.mubr.bf16.mxu0 %v1020_v15  ;;  %968 = vmatprep.mubr.bf16.mxu1 %v1036_v17 }
  0x32   :  { %937 = vmatmul.mubr.bf16.gmra.mrb[8].mxu0 %v1021_v18  ;;  %969 = vmatmul.mubr.bf16.gmra.mrb[8].mxu1 %v1037_v19 }
  0x33   :  { %940 = vmatprep.mubr.bf16.mxu0 %v1022_v20  ;;  %972 = vmatprep.mubr.bf16.mxu1 %v1038_v21 }
  0x3a   :  { %941 = vmatmul.mubr.bf16.gmra.mrb[12].mxu0 %v1023_v22  ;;  %973 = vmatmul.mubr.bf16.gmra.mrb[12].mxu1 %v1039_v23 }
  0x3b   :  { %944 = vmatprep.mubr.bf16.mxu0 %v1024_v24  ;;  %976 = vmatprep.mubr.bf16.mxu1 %v1040_v25 }
  0x42   :  { %945 = vmatmul.mubr.bf16.gmra.mrb[16].mxu0 %v1025_v26  ;;  %977 = vmatmul.mubr.bf16.gmra.mrb[16].mxu1 %v1041_v27 }
  0x43   :  { %948 = vmatprep.mubr.bf16.mxu0 %v1026_v28  ;;  %980 = vmatprep.mubr.bf16.mxu1 %v1042_v29 }
  0x4a   :  { %949 = vmatmul.mubr.bf16.gmra.mrb[20].mxu0 %v1027_v30  ;;  %981 = vmatmul.mubr.bf16.gmra.mrb[20].mxu1 %v1043_v31 }
  0x4b   :  { %952 = vmatprep.mubr.bf16.mxu0 %v1028_v32  ;;  %984 = vmatprep.mubr.bf16.mxu1 %v1044_v33 }
  0x52   :  { %953 = vmatmul.mubr.bf16.gmra.mrb[24].mxu0 %v1029_v34  ;;  %985 = vmatmul.mubr.bf16.gmra.mrb[24].mxu1 %v1045_v35 }
  0x53   :  { %956 = vmatprep.mubr.bf16.mxu0 %v1030_v36  ;;  %988 = vmatprep.mubr.bf16.mxu1 %v1046_v37 }
  0x5a   :  { %957 = vmatmul.mubr.bf16.gmra.mrb[28].mxu0 %v1031_v38  ;;  %989 = vmatmul.mubr.bf16.gmra.mrb[28].mxu1 %v1047_v39 }
  0xf5   :  { %v930_v40 = vpop.f32.mrb[0].mxu0  ;;  %v1183_v41 = vpop.f32.mrb[0].mxu1 }
  0xf6   :  { %v366_v42 = vpop.f32.mrb[1].mxu0  ;;  %v1185_v43 = vpop.f32.mrb[1].mxu1  ;;  %v692_v51 = vmul.f32 %v930_v40, %v930_v40 }
  0xf7   :  { %v931_v44 = vpop.f32.mrb[2].mxu0  ;;  %v1187_v45 = vpop.f32.mrb[2].mxu1  ;;  %v690_v48 = vmul.f32 %v366_v42, %v366_v42 }
  0xf8   :  { %v369_v46 = vpop.f32.mrb[3].mxu0  ;;  %v1189_v47 = vpop.f32.mrb[3].mxu1  ;;  %v693_v54 = vmul.f32 %v931_v44, %v931_v44 }
  0xf9   :  { %v621_v49 = vadd.f32 %v369_v46, %v366_v42  ;;  %v691_v50 = vmul.f32 %v369_v46, %v369_v46 }
  0xfb   :  { %v622_v52 = vadd.f32 %v930_v40, %v621_v49  ;;  %v754_v53 = vadd.f32 %v691_v50, %v690_v48 }
  0xfd   :  { %v755_v55 = vadd.f32 %v754_v53, %v692_v51  ;;  %v934_v56 = vpop.f32.mrb[4].mxu0  ;;  %v623_v57 = vadd.f32 %v931_v44, %v622_v52  ;;  %v1191_v58 = vpop.f32.mrb[4].mxu1 }
  0xfe   :  { %v382_v59 = vpop.f32.mrb[5].mxu0  ;;  %v1193_v60 = vpop.f32.mrb[5].mxu1  ;;  %v696_v7 = vmul.f32 %v934_v56, %v934_v56 }
  0xff   :  { %v624_v61 = vadd.f32 %v623_v57, %v382_v59  ;;  %v694_v62 = vmul.f32 %v382_v59, %v382_v59  ;;  %v756_v63 = vadd.f32 %v755_v55, %v693_v54  ;;  %v935_v0 = vpop.f32.mrb[6].mxu0  ;;  %v1195_v1 = vpop.f32.mrb[6].mxu1 }
 0x100   :  { %v385_v2 = vpop.f32.mrb[7].mxu0  ;;  %v1197_v3 = vpop.f32.mrb[7].mxu1  ;;  %v697_v10 = vmul.f32 %v935_v0, %v935_v0 }
 0x101   :  { %v757_v4 = vadd.f32 %v756_v63, %v694_v62  ;;  %v625_v5 = vadd.f32 %v624_v61, %v385_v2  ;;  %v695_v6 = vmul.f32 %v385_v2, %v385_v2 }
 0x103   :  { %v626_v8 = vadd.f32 %v934_v56, %v625_v5  ;;  %v758_v9 = vadd.f32 %v757_v4, %v695_v6 }
 0x105   :  { %v759_v11 = vadd.f32 %v758_v9, %v696_v7  ;;  %v938_v12 = vpop.f32.mrb[8].mxu0  ;;  %v627_v13 = vadd.f32 %v935_v0, %v626_v8  ;;  %v1199_v14 = vpop.f32.mrb[8].mxu1 }
 0x106   :  { %v398_v15 = vpop.f32.mrb[9].mxu0  ;;  %v1201_v16 = vpop.f32.mrb[9].mxu1  ;;  %v700_v27 = vmul.f32 %v938_v12, %v938_v12 }
 0x107   :  { %v628_v17 = vadd.f32 %v627_v13, %v398_v15  ;;  %v698_v18 = vmul.f32 %v398_v15, %v398_v15  ;;  %v760_v19 = vadd.f32 %v759_v11, %v697_v10  ;;  %v939_v20 = vpop.f32.mrb[10].mxu0  ;;  %v1203_v21 = vpop.f32.mrb[10].mxu1 }
 0x108   :  { %v401_v22 = vpop.f32.mrb[11].mxu0  ;;  %v1205_v23 = vpop.f32.mrb[11].mxu1  ;;  %v701_v30 = vmul.f32 %v939_v20, %v939_v20 }
 0x109   :  { %v761_v24 = vadd.f32 %v760_v19, %v698_v18  ;;  %v629_v25 = vadd.f32 %v628_v17, %v401_v22  ;;  %v699_v26 = vmul.f32 %v401_v22, %v401_v22 }
 0x10b   :  { %v630_v28 = vadd.f32 %v938_v12, %v629_v25  ;;  %v762_v29 = vadd.f32 %v761_v24, %v699_v26 }
 0x10d   :  { %v763_v31 = vadd.f32 %v762_v29, %v700_v27  ;;  %v942_v32 = vpop.f32.mrb[12].mxu0  ;;  %v631_v33 = vadd.f32 %v939_v20, %v630_v28  ;;  %v1207_v34 = vpop.f32.mrb[12].mxu1 }
 0x10e   :  { %v414_v35 = vpop.f32.mrb[13].mxu0  ;;  %v1209_v36 = vpop.f32.mrb[13].mxu1  ;;  %v704_v51 = vmul.f32 %v942_v32, %v942_v32 }
 0x10f   :  { %v632_v37 = vadd.f32 %v631_v33, %v414_v35  ;;  %v702_v38 = vmul.f32 %v414_v35, %v414_v35  ;;  %v764_v39 = vadd.f32 %v763_v31, %v701_v30  ;;  %v943_v40 = vpop.f32.mrb[14].mxu0  ;;  %v1211_v42 = vpop.f32.mrb[14].mxu1 }
 0x110   :  { %v417_v44 = vpop.f32.mrb[15].mxu0  ;;  %v1213_v46 = vpop.f32.mrb[15].mxu1  ;;  %v705_v54 = vmul.f32 %v943_v40, %v943_v40 }
 0x111   :  { %v765_v48 = vadd.f32 %v764_v39, %v702_v38  ;;  %v633_v49 = vadd.f32 %v632_v37, %v417_v44  ;;  %v703_v50 = vmul.f32 %v417_v44, %v417_v44 }
 0x113   :  { %v634_v52 = vadd.f32 %v942_v32, %v633_v49  ;;  %v766_v53 = vadd.f32 %v765_v48, %v703_v50 }
 0x115   :  { %v767_v55 = vadd.f32 %v766_v53, %v704_v51  ;;  %v946_v56 = vpop.f32.mrb[16].mxu0  ;;  %v635_v57 = vadd.f32 %v943_v40, %v634_v52  ;;  %v1215_v59 = vpop.f32.mrb[16].mxu1 }
 0x116   :  { %v430_v61 = vpop.f32.mrb[17].mxu0  ;;  %v1217_v62 = vpop.f32.mrb[17].mxu1  ;;  %v708_v11 = vmul.f32 %v946_v56, %v946_v56 }
 0x117   :  { %v636_v63 = vadd.f32 %v635_v57, %v430_v61  ;;  %v706_v0 = vmul.f32 %v430_v61, %v430_v61  ;;  %v768_v2 = vadd.f32 %v767_v55, %v705_v54  ;;  %v947_v4 = vpop.f32.mrb[18].mxu0  ;;  %v1219_v5 = vpop.f32.mrb[18].mxu1 }
 0x118   :  { %v433_v6 = vpop.f32.mrb[19].mxu0  ;;  %v1221_v7 = vpop.f32.mrb[19].mxu1  ;;  %v709_v15 = vmul.f32 %v947_v4, %v947_v4 }
 0x119   :  { %v769_v8 = vadd.f32 %v768_v2, %v706_v0  ;;  %v637_v9 = vadd.f32 %v636_v63, %v433_v6  ;;  %v707_v10 = vmul.f32 %v433_v6, %v433_v6 }
 0x11b   :  { %v638_v12 = vadd.f32 %v946_v56, %v637_v9  ;;  %v770_v13 = vadd.f32 %v769_v8, %v707_v10 }
 0x11d   :  { %v771_v17 = vadd.f32 %v770_v13, %v708_v11  ;;  %v950_v18 = vpop.f32.mrb[20].mxu0  ;;  %v639_v19 = vadd.f32 %v947_v4, %v638_v12  ;;  %v1223_v20 = vpop.f32.mrb[20].mxu1 }
 0x11e   :  { %v446_v22 = vpop.f32.mrb[21].mxu0  ;;  %v1225_v24 = vpop.f32.mrb[21].mxu1  ;;  %v712_v37 = vmul.f32 %v950_v18, %v950_v18 }
 0x11f   :  { %v640_v25 = vadd.f32 %v639_v19, %v446_v22  ;;  %v710_v26 = vmul.f32 %v446_v22, %v446_v22  ;;  %v772_v27 = vadd.f32 %v771_v17, %v709_v15  ;;  %v951_v28 = vpop.f32.mrb[22].mxu0  ;;  %v1227_v29 = vpop.f32.mrb[22].mxu1 }
 0x120   :  { %v449_v30 = vpop.f32.mrb[23].mxu0  ;;  %v1229_v31 = vpop.f32.mrb[23].mxu1  ;;  %v713_v40 = vmul.f32 %v951_v28, %v951_v28 }
 0x121   :  { %v773_v32 = vadd.f32 %v772_v27, %v710_v26  ;;  %v641_v33 = vadd.f32 %v640_v25, %v449_v30  ;;  %v711_v35 = vmul.f32 %v449_v30, %v449_v30 }
 0x123   :  { %v642_v38 = vadd.f32 %v950_v18, %v641_v33  ;;  %v774_v39 = vadd.f32 %v773_v32, %v711_v35 }
 0x125   :  { %v775_v44 = vadd.f32 %v774_v39, %v712_v37  ;;  %v954_v48 = vpop.f32.mrb[24].mxu0  ;;  %v643_v49 = vadd.f32 %v951_v28, %v642_v38  ;;  %v1231_v50 = vpop.f32.mrb[24].mxu1 }
 0x126   :  { %v462_v51 = vpop.f32.mrb[25].mxu0  ;;  %v1233_v52 = vpop.f32.mrb[25].mxu1  ;;  %v716_v6 = vmul.f32 %v954_v48, %v954_v48 }
 0x127   :  { %v644_v53 = vadd.f32 %v643_v49, %v462_v51  ;;  %v714_v54 = vmul.f32 %v462_v51, %v462_v51  ;;  %v776_v55 = vadd.f32 %v775_v44, %v713_v40  ;;  %v955_v56 = vpop.f32.mrb[26].mxu0  ;;  %v1235_v57 = vpop.f32.mrb[26].mxu1  ;;  %v722_v49 = vmul.f32 %v1185_v43, %v1185_v43 }
 0x128   :  { %v465_v61 = vpop.f32.mrb[27].mxu0  ;;  %v1237_v63 = vpop.f32.mrb[27].mxu1  ;;  %v717_v10 = vmul.f32 %v955_v56, %v955_v56 }
 0x129   :  { %v777_v0 = vadd.f32 %v776_v55, %v714_v54  ;;  %v645_v2 = vadd.f32 %v644_v53, %v465_v61  ;;  %v715_v4 = vmul.f32 %v465_v61, %v465_v61  ;;  %v724_v61 = vmul.f32 %v1183_v41, %v1183_v41 }
 0x12b   :  { %v646_v8 = vadd.f32 %v954_v48, %v645_v2  ;;  %v778_v9 = vadd.f32 %v777_v0, %v715_v4  ;;  %v725_v4 = vmul.f32 %v1187_v45, %v1187_v45 }
 0x12d   :  { %v779_v11 = vadd.f32 %v778_v9, %v716_v6  ;;  %v958_v12 = vpop.f32.mrb[28].mxu0  ;;  %v647_v13 = vadd.f32 %v955_v56, %v646_v8  ;;  %v1239_v15 = vpop.f32.mrb[28].mxu1  ;;  %v723_v56 = vmul.f32 %v1189_v47, %v1189_v47 }
 0x12e   :  { %v478_v17 = vpop.f32.mrb[29].mxu0  ;;  %v1241_v18 = vpop.f32.mrb[29].mxu1  ;;  %v720_v37 = vmul.f32 %v958_v12, %v958_v12 }
 0x12f   :  { %v648_v19 = vadd.f32 %v647_v13, %v478_v17  ;;  %v718_v22 = vmul.f32 %v478_v17, %v478_v17  ;;  %v780_v25 = vadd.f32 %v779_v11, %v717_v10  ;;  %v959_v26 = vpop.f32.mrb[30].mxu0  ;;  %v1243_v27 = vpop.f32.mrb[30].mxu1 }
 0x130   :  { %v481_v28 = vpop.f32.mrb[31].mxu0  ;;  %v1245_v30 = vpop.f32.mrb[31].mxu1  ;;  %v721_v40 = vmul.f32 %v959_v26, %v959_v26 }
 0x131   :  { %v781_v32 = vadd.f32 %v780_v25, %v718_v22  ;;  %v649_v33 = vadd.f32 %v648_v19, %v481_v28  ;;  %v719_v35 = vmul.f32 %v481_v28, %v481_v28 }
 0x133   :  { %v650_v38 = vadd.f32 %v958_v12, %v649_v33  ;;  %v782_v39 = vadd.f32 %v781_v32, %v719_v35  ;;  %v727_v12 = vmul.f32 %v1197_v3, %v1197_v3  ;;  %v731_v32 = vmul.f32 %v1205_v23, %v1205_v23 }
 0x135   :  { %v783_v44 = vadd.f32 %v782_v39, %v720_v37  ;;  %v651_v48 = vadd.f32 %v959_v26, %v650_v38 }
 0x137   :  { %v652_v51 = vadd.f32 %v651_v48, %v1185_v43  ;;  %v784_v53 = vadd.f32 %v783_v44, %v721_v40  ;;  %v726_v43 = vmul.f32 %v1193_v60, %v1193_v60  ;;  %v735_v48 = vmul.f32 %v1213_v46, %v1213_v46 }
 0x139   :  { %v785_v54 = vadd.f32 %v784_v53, %v722_v49  ;;  %v653_v55 = vadd.f32 %v652_v51, %v1189_v47 }
 0x13b   :  { %v654_v0 = vadd.f32 %v1183_v41, %v653_v55  ;;  %v786_v2 = vadd.f32 %v785_v54, %v723_v56  ;;  %v728_v41 = vmul.f32 %v1191_v58, %v1191_v58 }
 0x13d   :  { %v787_v6 = vadd.f32 %v786_v2, %v724_v61  ;;  %v655_v8 = vadd.f32 %v1187_v45, %v654_v0  ;;  %v729_v45 = vmul.f32 %v1195_v1, %v1195_v1  ;;  %v739_v0 = vmul.f32 %v1221_v7, %v1221_v7 }
 0x13f   :  { %v656_v9 = vadd.f32 %v655_v8, %v1193_v60  ;;  %v788_v10 = vadd.f32 %v787_v6, %v725_v4  ;;  %v730_v60 = vmul.f32 %v1201_v16, %v1201_v16 }
 0x141   :  { %v789_v11 = vadd.f32 %v788_v10, %v726_v43  ;;  %v657_v47 = vadd.f32 %v656_v9, %v1197_v3 }
 0x143   :  { %v658_v13 = vadd.f32 %v1191_v58, %v657_v47  ;;  %v790_v17 = vadd.f32 %v789_v11, %v727_v12  ;;  %v732_v58 = vmul.f32 %v1199_v14, %v1199_v14  ;;  %v743_v11 = vmul.f32 %v1229_v31, %v1229_v31 }
 0x145   :  { %v791_v19 = vadd.f32 %v790_v17, %v728_v41  ;;  %v659_v22 = vadd.f32 %v1195_v1, %v658_v13  ;;  %v733_v1 = vmul.f32 %v1203_v21, %v1203_v21 }
 0x147   :  { %v660_v25 = vadd.f32 %v659_v22, %v1201_v16  ;;  %v792_v26 = vadd.f32 %v791_v19, %v729_v45  ;;  %v734_v16 = vmul.f32 %v1209_v36, %v1209_v36  ;;  %v747_v22 = vmul.f32 %v1237_v63, %v1237_v63 }
 0x149   :  { %v793_v28 = vadd.f32 %v792_v26, %v730_v60  ;;  %v661_v3 = vadd.f32 %v660_v25, %v1205_v23 }
 0x14b   :  { %v662_v33 = vadd.f32 %v1199_v14, %v661_v3  ;;  %v794_v35 = vadd.f32 %v793_v28, %v731_v32  ;;  %v736_v14 = vmul.f32 %v1207_v34, %v1207_v34 }
 0x14d   :  { %v795_v37 = vadd.f32 %v794_v35, %v732_v58  ;;  %v663_v38 = vadd.f32 %v1203_v21, %v662_v33  ;;  %v737_v21 = vmul.f32 %v1211_v42, %v1211_v42  ;;  %v751_v33 = vmul.f32 %v1245_v30, %v1245_v30 }
 0x14f   :  { %v664_v39 = vadd.f32 %v663_v38, %v1209_v36  ;;  %v796_v40 = vadd.f32 %v795_v37, %v733_v1  ;;  %v738_v36 = vmul.f32 %v1217_v62, %v1217_v62 }
 0x151   :  { %v797_v44 = vadd.f32 %v796_v40, %v734_v16  ;;  %v665_v23 = vadd.f32 %v664_v39, %v1213_v46 }
 0x153   :  { %v666_v49 = vadd.f32 %v1207_v34, %v665_v23  ;;  %v798_v51 = vadd.f32 %v797_v44, %v735_v48  ;;  %v740_v34 = vmul.f32 %v1215_v59, %v1215_v59 }
 0x155   :  { %v799_v53 = vadd.f32 %v798_v51, %v736_v14  ;;  %v667_v54 = vadd.f32 %v1211_v42, %v666_v49  ;;  %v741_v42 = vmul.f32 %v1219_v5, %v1219_v5 }
 0x157   :  { %v668_v55 = vadd.f32 %v667_v54, %v1217_v62  ;;  %v800_v56 = vadd.f32 %v799_v53, %v737_v21  ;;  %v742_v62 = vmul.f32 %v1225_v24, %v1225_v24 }
 0x159   :  { %v801_v61 = vadd.f32 %v800_v56, %v738_v36  ;;  %v669_v46 = vadd.f32 %v668_v55, %v1221_v7 }
 0x15b   :  { %v670_v2 = vadd.f32 %v1215_v59, %v669_v46  ;;  %v802_v4 = vadd.f32 %v801_v61, %v739_v0  ;;  %v744_v59 = vmul.f32 %v1223_v20, %v1223_v20 }
 0x15d   :  { %v803_v6 = vadd.f32 %v802_v4, %v740_v34  ;;  %v671_v8 = vadd.f32 %v1219_v5, %v670_v2  ;;  %v745_v5 = vmul.f32 %v1227_v29, %v1227_v29 }
 0x15f   :  { %v672_v43 = vadd.f32 %v671_v8, %v1225_v24  ;;  %v804_v9 = vadd.f32 %v803_v6, %v741_v42  ;;  %v746_v24 = vmul.f32 %v1233_v52, %v1233_v52 }
 0x161   :  { %v805_v10 = vadd.f32 %v804_v9, %v742_v62  ;;  %v673_v7 = vadd.f32 %v672_v43, %v1229_v31 }
 0x163   :  { %v674_v47 = vadd.f32 %v1223_v20, %v673_v7  ;;  %v806_v12 = vadd.f32 %v805_v10, %v743_v11  ;;  %v748_v20 = vmul.f32 %v1231_v50, %v1231_v50 }
 0x165   :  { %v807_v41 = vadd.f32 %v806_v12, %v744_v59  ;;  %v675_v13 = vadd.f32 %v1227_v29, %v674_v47  ;;  %v749_v29 = vmul.f32 %v1235_v57, %v1235_v57 }
 0x167   :  { %v676_v17 = vadd.f32 %v675_v13, %v1233_v52  ;;  %v808_v45 = vadd.f32 %v807_v41, %v745_v5  ;;  %v750_v52 = vmul.f32 %v1241_v18, %v1241_v18 }
 0x169   :  { %v809_v19 = vadd.f32 %v808_v45, %v746_v24  ;;  %v677_v31 = vadd.f32 %v676_v17, %v1237_v63 }
 0x16b   :  { %v678_v60 = vadd.f32 %v1231_v50, %v677_v31  ;;  %v810_v25 = vadd.f32 %v809_v19, %v747_v22  ;;  %v752_v50 = vmul.f32 %v1239_v15, %v1239_v15 }
 0x16d   :  { %v811_v26 = vadd.f32 %v810_v25, %v748_v20  ;;  %v679_v28 = vadd.f32 %v1235_v57, %v678_v60  ;;  %v753_v57 = vmul.f32 %v1243_v27, %v1243_v27 }
 0x16f   :  { %v680_v3 = vadd.f32 %v679_v28, %v1241_v18  ;;  %v812_v32 = vadd.f32 %v811_v26, %v749_v29 }
 0x171   :  { %v813_v58 = vadd.f32 %v812_v32, %v750_v52  ;;  %v681_v63 = vadd.f32 %v680_v3, %v1245_v30 }
 0x173   :  { %v682_v35 = vadd.f32 %v1239_v15, %v681_v63  ;;  %v814_v1 = vadd.f32 %v813_v58, %v751_v33 }
 0x175   :  { %v683_v37 = vadd.f32 %v1243_v27, %v682_v35  ;;  %v815_v38 = vadd.f32 %v814_v1, %v752_v50 }
 0x177   :  { %v684_v18 = vrot.slane %v683_v37, 4  ;;  %v816_v16 = vadd.f32 %v815_v38, %v753_v57 }
 0x179   :  { %v685_v39 = vadd.f32 %v684_v18, %v683_v37  ;;  %v817_v40 = vrot.slane %v816_v16, 4 }
 0x17b   :  { %v686_v44 = vrot.slane %v685_v39, 2  ;;  %v818_v23 = vadd.f32 %v817_v40, %v816_v16 }
 0x17d   :  { %v687_v48 = vadd.f32 %v686_v44, %v685_v39  ;;  %v819_v30 = vrot.slane %v818_v23, 2 }
 0x17f   :  { %v688_v14 = vrot.slane %v687_v48, 1  ;;  %v820_v49 = vadd.f32 %v819_v30, %v818_v23 }
 0x181   :  { %v821_v51 = vrot.slane %v820_v49, 1  ;;  %v689_v15 = vadd.f32 %v688_v14, %v687_v48 }
 0x183   :  { %v822_v21 = vadd.f32 %v821_v51, %v820_v49 }
 0x185   :  { %v824_v53 = vsel %vm823_vm0, %v689_v15, %v822_v21 }
 0x186   :  { %v826_v54 = vsel %vm825_vm1, %v824_v53, 0.0 }
 0x187   :  { %827 = vst [vmem:[%s1348_s2] sm:$0xff] %v826_v54 }

// kernel: conv2d_bn_relu.3
= control target key start
LH: loop header
LB: loop body
LE: loop exit
PB: predicated region body
PF: predicated region fallthrough
CT: control target
= control target key end

     0   :  { %s1594_s1 = inlined_call_operand.vmem [shape: bf16[128,128], index: 1, kind: input, shape index: {}]   ;;  %s1595_s0 = inlined_call_operand.vmem [shape: bf16[512,128], index: 0, kind: input, shape index: {}]   ;;  %s1596_s2 = inlined_call_operand.vmem [shape: f32[1,128], index: 2, kind: input, shape index: {}]   ;;  %s1597_s3 = inlined_call_operand.vmem [shape: f32[1,128], index: 3, kind: input, shape index: {}]   ;;  %s1598_s4 = inlined_call_operand.vmem [shape: f32[512,128], index: 4, kind: output, shape index: {}]  }
   0x1   :  { %v1079_v0 = vld [vmem:[%s1594_s1] sm:$0xff]   ;;  %v1080_v1 = vld [vmem:[%s1594_s1 + $0x8] sm:$0xff]   ;;  %v1081_v2 = vld [vmem:[%s1594_s1 + $0x10] sm:$0xff]  }
   0x2   :  { %983 = vmatprep.subr.bf16.mxu0 %v1079_v0  ;;  %1063 = vmatprep.subr.bf16.mxu1 %v1079_v0  ;;  %v1082_v3 = vld [vmem:[%s1594_s1 + $0x18] sm:$0xff]   ;;  %v1087_v4 = vld [vmem:[%s1595_s0] sm:$0xff]   ;;  %v1084_v7 = vld [vmem:[%s1594_s1 + $0x28] sm:$0xff]  }
   0x3   :  { %984 = vmatpush3.bf16.msra.mxu0 %v1079_v0  ;;  %1071 = vmatpush3.bf16.msra.mxu1 %v1079_v0  ;;  %v1088_v5 = vld [vmem:[%s1595_s0 + $0x80] sm:$0xff]   ;;  %v1085_v8 = vld [vmem:[%s1594_s1 + $0x30] sm:$0xff]   ;;  %v1086_v9 = vld [vmem:[%s1594_s1 + $0x38] sm:$0xff]  }
   0x4   :  { %985 = vmatprep.subr.bf16.mxu0 %v1080_v1  ;;  %1064 = vmatprep.subr.bf16.mxu1 %v1080_v1  ;;  %v1083_v6 = vld [vmem:[%s1594_s1 + $0x20] sm:$0xff]   ;;  %v1089_v10 = vld [vmem:[%s1595_s0 + $0x8] sm:$0xff]   ;;  %v1091_v12 = vld [vmem:[%s1595_s0 + $0x10] sm:$0xff]  }
   0x5   :  { %999 = vmatprep.mubr.bf16.mxu0 %v1087_v4  ;;  %1031 = vmatprep.mubr.bf16.mxu1 %v1088_v5  ;;  %v1090_v11 = vld [vmem:[%s1595_s0 + $0x88] sm:$0xff]   ;;  %v1092_v13 = vld [vmem:[%s1595_s0 + $0x90] sm:$0xff]   ;;  %v1093_v14 = vld [vmem:[%s1595_s0 + $0x18] sm:$0xff]  }
   0x6   :  { %v1094_v15 = vld [vmem:[%s1595_s0 + $0x98] sm:$0xff]   ;;  %v1095_v16 = vld [vmem:[%s1595_s0 + $0x20] sm:$0xff]   ;;  %v1097_v18 = vld [vmem:[%s1595_s0 + $0x28] sm:$0xff]  }
   0x7   :  { %986 = vmatpush3.bf16.msra.mxu0 %v1080_v1  ;;  %1072 = vmatpush3.bf16.msra.mxu1 %v1080_v1  ;;  %v1096_v17 = vld [vmem:[%s1595_s0 + $0xa0] sm:$0xff]   ;;  %v1098_v19 = vld [vmem:[%s1595_s0 + $0xa8] sm:$0xff]   ;;  %v1099_v20 = vld [vmem:[%s1595_s0 + $0x30] sm:$0xff]  }
   0x8   :  { %987 = vmatprep.subr.bf16.mxu0 %v1081_v2  ;;  %1065 = vmatprep.subr.bf16.mxu1 %v1081_v2  ;;  %v1100_v21 = vld [vmem:[%s1595_s0 + $0xb0] sm:$0xff]   ;;  %v1101_v22 = vld [vmem:[%s1595_s0 + $0x38] sm:$0xff]   ;;  %v1103_v24 = vld [vmem:[%s1595_s0 + $0x40] sm:$0xff]  }
   0x9   :  { %v1102_v23 = vld [vmem:[%s1595_s0 + $0xb8] sm:$0xff]   ;;  %v1104_v25 = vld [vmem:[%s1595_s0 + $0xc0] sm:$0xff]   ;;  %v1105_v26 = vld [vmem:[%s1595_s0 + $0x48] sm:$0xff]  }
   0xa   :  { %v1106_v27 = vld [vmem:[%s1595_s0 + $0xc8] sm:$0xff]   ;;  %v1107_v28 = vld [vmem:[%s1595_s0 + $0x50] sm:$0xff]   ;;  %v1109_v30 = vld [vmem:[%s1595_s0 + $0x58] sm:$0xff]  }
   0xb   :  { %988 = vmatpush3.bf16.msra.mxu0 %v1081_v2  ;;  %1073 = vmatpush3.bf16.msra.mxu1 %v1081_v2  ;;  %v1108_v29 = vld [vmem:[%s1595_s0 + $0xd0] sm:$0xff]   ;;  %v1110_v31 = vld [vmem:[%s1595_s0 + $0xd8] sm:$0xff]   ;;  %v1111_v32 = vld [vmem:[%s1595_s0 + $0x60] sm:$0xff]  }
   0xc   :  { %989 = vmatprep.subr.bf16.mxu0 %v1082_v3  ;;  %1066 = vmatprep.subr.bf16.mxu1 %v1082_v3  ;;  %v1112_v33 = vld [vmem:[%s1595_s0 + $0xe0] sm:$0xff]   ;;  %v1113_v34 = vld [vmem:[%s1595_s0 + $0x68] sm:$0xff]   ;;  %v1115_v36 = vld [vmem:[%s1595_s0 + $0x70] sm:$0xff]  }
   0xd   :  { %v1114_v35 = vld [vmem:[%s1595_s0 + $0xe8] sm:$0xff]   ;;  %v1116_v37 = vld [vmem:[%s1595_s0 + $0xf0] sm:$0xff]   ;;  %v1117_v38 = vld [vmem:[%s1595_s0 + $0x78] sm:$0xff]  }
   0xe   :  { %v1118_v39 = vld [vmem:[%s1595_s0 + $0xf8] sm:$0xff]   ;;  %v1267_v40 = vld [vmem:[%s1596_s2] ss:$0 sm:$0xff] }
   0xf   :  { %990 = vmatpush3.bf16.msra.mxu0 %v1082_v3  ;;  %1074 = vmatpush3.bf16.msra.mxu1 %v1082_v3  ;;  %v1272_v42 = vld [vmem:[%s1597_s3] ss:$0 sm:$0xff] }
  0x10   :  { %991 = vmatprep.subr.bf16.mxu0 %v1083_v6  ;;  %1067 = vmatprep.subr.bf16.mxu1 %v1083_v6 }
  0x13   :  { %992 = vmatpush3.bf16.msra.mxu0 %v1083_v6  ;;  %1075 = vmatpush3.bf16.msra.mxu1 %v1083_v6 }
  0x14   :  { %993 = vmatprep.subr.bf16.mxu0 %v1084_v7  ;;  %1068 = vmatprep.subr.bf16.mxu1 %v1084_v7 }
  0x17   :  { %994 = vmatpush3.bf16.msra.mxu0 %v1084_v7  ;;  %1076 = vmatpush3.bf16.msra.mxu1 %v1084_v7 }
  0x18   :  { %995 = vmatprep.subr.bf16.mxu0 %v1085_v8  ;;  %1069 = vmatprep.subr.bf16.mxu1 %v1085_v8 }
  0x1b   :  { %996 = vmatpush3.bf16.msra.mxu0 %v1085_v8  ;;  %1077 = vmatpush3.bf16.msra.mxu1 %v1085_v8 }
  0x1c   :  { %997 = vmatprep.subr.bf16.mxu0 %v1086_v9  ;;  %1070 = vmatprep.subr.bf16.mxu1 %v1086_v9 }
  0x1f   :  { %998 = vmatpush3.bf16.msra.mxu0 %v1086_v9  ;;  %1078 = vmatpush3.bf16.msra.mxu1 %v1086_v9 }
  0x22   :  { %1000 = vmatmul.mubr.bf16.vlgmr.msra.gmra.mrb[0].mxu0 %v1089_v10  ;;  %1032 = vmatmul.mubr.bf16.vlgmr.msra.gmra.mrb[0].mxu1 %v1090_v11 }
  0x23   :  { %1003 = vmatprep.mubr.bf16.mxu0 %v1091_v12  ;;  %1035 = vmatprep.mubr.bf16.mxu1 %v1092_v13 }
  0x2a   :  { %1004 = vmatmul.mubr.bf16.gmra.mrb[4].mxu0 %v1093_v14  ;;  %1036 = vmatmul.mubr.bf16.gmra.mrb[4].mxu1 %v1094_v15 }
  0x2b   :  { %1007 = vmatprep.mubr.bf16.mxu0 %v1095_v16  ;;  %1039 = vmatprep.mubr.bf16.mxu1 %v1096_v17 }
  0x32   :  { %1008 = vmatmul.mubr.bf16.gmra.mrb[8].mxu0 %v1097_v18  ;;  %1040 = vmatmul.mubr.bf16.gmra.mrb[8].mxu1 %v1098_v19 }
  0x33   :  { %1011 = vmatprep.mubr.bf16.mxu0 %v1099_v20  ;;  %1043 = vmatprep.mubr.bf16.mxu1 %v1100_v21 }
  0x3a   :  { %1012 = vmatmul.mubr.bf16.gmra.mrb[12].mxu0 %v1101_v22  ;;  %1044 = vmatmul.mubr.bf16.gmra.mrb[12].mxu1 %v1102_v23 }
  0x3b   :  { %1015 = vmatprep.mubr.bf16.mxu0 %v1103_v24  ;;  %1047 = vmatprep.mubr.bf16.mxu1 %v1104_v25 }
  0x42   :  { %1016 = vmatmul.mubr.bf16.gmra.mrb[16].mxu0 %v1105_v26  ;;  %1048 = vmatmul.mubr.bf16.gmra.mrb[16].mxu1 %v1106_v27 }
  0x43   :  { %1019 = vmatprep.mubr.bf16.mxu0 %v1107_v28  ;;  %1051 = vmatprep.mubr.bf16.mxu1 %v1108_v29 }
  0x4a   :  { %1020 = vmatmul.mubr.bf16.gmra.mrb[20].mxu0 %v1109_v30  ;;  %1052 = vmatmul.mubr.bf16.gmra.mrb[20].mxu1 %v1110_v31 }
  0x4b   :  { %1023 = vmatprep.mubr.bf16.mxu0 %v1111_v32  ;;  %1055 = vmatprep.mubr.bf16.mxu1 %v1112_v33 }
  0x52   :  { %1024 = vmatmul.mubr.bf16.gmra.mrb[24].mxu0 %v1113_v34  ;;  %1056 = vmatmul.mubr.bf16.gmra.mrb[24].mxu1 %v1114_v35 }
  0x53   :  { %1027 = vmatprep.mubr.bf16.mxu0 %v1115_v36  ;;  %1059 = vmatprep.mubr.bf16.mxu1 %v1116_v37 }
  0x5a   :  { %1028 = vmatmul.mubr.bf16.gmra.mrb[28].mxu0 %v1117_v38  ;;  %1060 = vmatmul.mubr.bf16.gmra.mrb[28].mxu1 %v1118_v39 }
  0xf5   :  { %v1001_v41 = vpop.f32.mrb[0].mxu0  ;;  %v1033_v43 = vpop.f32.mrb[0].mxu1 }
  0xf6   :  { %v636_v44 = vmul.f32 %v1001_v41, %v1267_v40  ;;  %v668_v45 = vmul.f32 %v1033_v43, %v1267_v40  ;;  %v372_v46 = vpop.f32.mrb[1].mxu0  ;;  %v500_v47 = vpop.f32.mrb[1].mxu1 }
  0xf7   :  { %v634_v48 = vmul.f32 %v1267_v40, %v372_v46  ;;  %v666_v49 = vmul.f32 %v1267_v40, %v500_v47  ;;  %v1002_v50 = vpop.f32.mrb[2].mxu0  ;;  %v1034_v51 = vpop.f32.mrb[2].mxu1 }
  0xf8   :  { %v707_v52 = vadd.f32 %v1272_v42, %v636_v44  ;;  %v739_v53 = vadd.f32 %v1272_v42, %v668_v45  ;;  %v637_v54 = vmul.f32 %v1002_v50, %v1267_v40  ;;  %v669_v55 = vmul.f32 %v1034_v51, %v1267_v40  ;;  %v375_v56 = vpop.f32.mrb[3].mxu0  ;;  %v503_v57 = vpop.f32.mrb[3].mxu1 }
  0xf9   :  { %v705_v58 = vadd.f32 %v1272_v42, %v634_v48  ;;  %v737_v59 = vadd.f32 %v1272_v42, %v666_v49  ;;  %v635_v60 = vmul.f32 %v1267_v40, %v375_v56  ;;  %v667_v61 = vmul.f32 %v1267_v40, %v503_v57 }
  0xfa   :  { %v771_v62 = vmax.f32 %v707_v52, 0.0  ;;  %v803_v63 = vmax.f32 %v739_v53, 0.0  ;;  %v708_v0 = vadd.f32 %v1272_v42, %v637_v54  ;;  %v740_v1 = vadd.f32 %v1272_v42, %v669_v55 }
  0xfb   :  { %v769_v2 = vmax.f32 %v705_v58, 0.0  ;;  %v801_v3 = vmax.f32 %v737_v59, 0.0  ;;  %v706_v4 = vadd.f32 %v1272_v42, %v635_v60  ;;  %v738_v5 = vadd.f32 %v1272_v42, %v667_v61 }
  0xfc   :  { %835 = vst [vmem:[%s1598_s4 + $0x10] sm:$0xff] %v771_v62  ;;  %867 = vst [vmem:[%s1598_s4 + $0x110] sm:$0xff] %v803_v63  ;;  %v772_v6 = vmax.f32 %v708_v0, 0.0  ;;  %v804_v7 = vmax.f32 %v740_v1, 0.0 }
  0xfd   :  { %833 = vst [vmem:[%s1598_s4] sm:$0xff] %v769_v2  ;;  %865 = vst [vmem:[%s1598_s4 + $0x100] sm:$0xff] %v801_v3  ;;  %v770_v8 = vmax.f32 %v706_v4, 0.0  ;;  %v802_v9 = vmax.f32 %v738_v5, 0.0  ;;  %v1005_v10 = vpop.f32.mrb[4].mxu0  ;;  %v1037_v11 = vpop.f32.mrb[4].mxu1 }
  0xfe   :  { %836 = vst [vmem:[%s1598_s4 + $0x18] sm:$0xff] %v772_v6  ;;  %868 = vst [vmem:[%s1598_s4 + $0x118] sm:$0xff] %v804_v7  ;;  %v640_v12 = vmul.f32 %v1005_v10, %v1267_v40  ;;  %v672_v13 = vmul.f32 %v1037_v11, %v1267_v40  ;;  %v388_v14 = vpop.f32.mrb[5].mxu0  ;;  %v516_v15 = vpop.f32.mrb[5].mxu1 }
  0xff   :  { %834 = vst [vmem:[%s1598_s4 + $0x8] sm:$0xff] %v770_v8  ;;  %866 = vst [vmem:[%s1598_s4 + $0x108] sm:$0xff] %v802_v9  ;;  %v638_v16 = vmul.f32 %v1267_v40, %v388_v14  ;;  %v670_v17 = vmul.f32 %v1267_v40, %v516_v15  ;;  %v1006_v18 = vpop.f32.mrb[6].mxu0  ;;  %v1038_v19 = vpop.f32.mrb[6].mxu1 }
 0x100   :  { %v711_v20 = vadd.f32 %v1272_v42, %v640_v12  ;;  %v743_v21 = vadd.f32 %v1272_v42, %v672_v13  ;;  %v641_v22 = vmul.f32 %v1006_v18, %v1267_v40  ;;  %v673_v23 = vmul.f32 %v1038_v19, %v1267_v40  ;;  %v391_v24 = vpop.f32.mrb[7].mxu0  ;;  %v519_v25 = vpop.f32.mrb[7].mxu1 }
 0x101   :  { %v709_v26 = vadd.f32 %v1272_v42, %v638_v16  ;;  %v741_v27 = vadd.f32 %v1272_v42, %v670_v17  ;;  %v639_v28 = vmul.f32 %v1267_v40, %v391_v24  ;;  %v671_v29 = vmul.f32 %v1267_v40, %v519_v25 }
 0x102   :  { %v775_v30 = vmax.f32 %v711_v20, 0.0  ;;  %v807_v31 = vmax.f32 %v743_v21, 0.0  ;;  %v712_v32 = vadd.f32 %v1272_v42, %v641_v22  ;;  %v744_v33 = vadd.f32 %v1272_v42, %v673_v23 }
 0x103   :  { %v773_v34 = vmax.f32 %v709_v26, 0.0  ;;  %v805_v35 = vmax.f32 %v741_v27, 0.0  ;;  %v710_v36 = vadd.f32 %v1272_v42, %v639_v28  ;;  %v742_v37 = vadd.f32 %v1272_v42, %v671_v29 }
 0x104   :  { %839 = vst [vmem:[%s1598_s4 + $0x30] sm:$0xff] %v775_v30  ;;  %871 = vst [vmem:[%s1598_s4 + $0x130] sm:$0xff] %v807_v31  ;;  %v776_v38 = vmax.f32 %v712_v32, 0.0  ;;  %v808_v39 = vmax.f32 %v744_v33, 0.0 }
 0x105   :  { %837 = vst [vmem:[%s1598_s4 + $0x20] sm:$0xff] %v773_v34  ;;  %869 = vst [vmem:[%s1598_s4 + $0x120] sm:$0xff] %v805_v35  ;;  %v774_v41 = vmax.f32 %v710_v36, 0.0  ;;  %v806_v43 = vmax.f32 %v742_v37, 0.0  ;;  %v1009_v44 = vpop.f32.mrb[8].mxu0  ;;  %v1041_v45 = vpop.f32.mrb[8].mxu1 }
 0x106   :  { %840 = vst [vmem:[%s1598_s4 + $0x38] sm:$0xff] %v776_v38  ;;  %872 = vst [vmem:[%s1598_s4 + $0x138] sm:$0xff] %v808_v39  ;;  %v644_v46 = vmul.f32 %v1009_v44, %v1267_v40  ;;  %v676_v47 = vmul.f32 %v1041_v45, %v1267_v40  ;;  %v404_v48 = vpop.f32.mrb[9].mxu0  ;;  %v532_v49 = vpop.f32.mrb[9].mxu1 }
 0x107   :  { %838 = vst [vmem:[%s1598_s4 + $0x28] sm:$0xff] %v774_v41  ;;  %870 = vst [vmem:[%s1598_s4 + $0x128] sm:$0xff] %v806_v43  ;;  %v642_v50 = vmul.f32 %v1267_v40, %v404_v48  ;;  %v674_v51 = vmul.f32 %v1267_v40, %v532_v49  ;;  %v1010_v52 = vpop.f32.mrb[10].mxu0  ;;  %v1042_v53 = vpop.f32.mrb[10].mxu1 }
 0x108   :  { %v715_v54 = vadd.f32 %v1272_v42, %v644_v46  ;;  %v747_v55 = vadd.f32 %v1272_v42, %v676_v47  ;;  %v645_v56 = vmul.f32 %v1010_v52, %v1267_v40  ;;  %v677_v57 = vmul.f32 %v1042_v53, %v1267_v40  ;;  %v407_v58 = vpop.f32.mrb[11].mxu0  ;;  %v535_v59 = vpop.f32.mrb[11].mxu1 }
 0x109   :  { %v713_v60 = vadd.f32 %v1272_v42, %v642_v50  ;;  %v745_v61 = vadd.f32 %v1272_v42, %v674_v51  ;;  %v643_v62 = vmul.f32 %v1267_v40, %v407_v58  ;;  %v675_v63 = vmul.f32 %v1267_v40, %v535_v59 }
 0x10a   :  { %v779_v0 = vmax.f32 %v715_v54, 0.0  ;;  %v811_v1 = vmax.f32 %v747_v55, 0.0  ;;  %v716_v2 = vadd.f32 %v1272_v42, %v645_v56  ;;  %v748_v3 = vadd.f32 %v1272_v42, %v677_v57 }
 0x10b   :  { %v777_v4 = vmax.f32 %v713_v60, 0.0  ;;  %v809_v5 = vmax.f32 %v745_v61, 0.0  ;;  %v714_v6 = vadd.f32 %v1272_v42, %v643_v62  ;;  %v746_v7 = vadd.f32 %v1272_v42, %v675_v63 }
 0x10c   :  { %843 = vst [vmem:[%s1598_s4 + $0x50] sm:$0xff] %v779_v0  ;;  %875 = vst [vmem:[%s1598_s4 + $0x150] sm:$0xff] %v811_v1  ;;  %v780_v8 = vmax.f32 %v716_v2, 0.0  ;;  %v812_v9 = vmax.f32 %v748_v3, 0.0 }
 0x10d   :  { %841 = vst [vmem:[%s1598_s4 + $0x40] sm:$0xff] %v777_v4  ;;  %873 = vst [vmem:[%s1598_s4 + $0x140] sm:$0xff] %v809_v5  ;;  %v778_v10 = vmax.f32 %v714_v6, 0.0  ;;  %v810_v11 = vmax.f32 %v746_v7, 0.0  ;;  %v1013_v12 = vpop.f32.mrb[12].mxu0  ;;  %v1045_v13 = vpop.f32.mrb[12].mxu1 }
 0x10e   :  { %844 = vst [vmem:[%s1598_s4 + $0x58] sm:$0xff] %v780_v8  ;;  %876 = vst [vmem:[%s1598_s4 + $0x158] sm:$0xff] %v812_v9  ;;  %v648_v14 = vmul.f32 %v1013_v12, %v1267_v40  ;;  %v680_v15 = vmul.f32 %v1045_v13, %v1267_v40  ;;  %v420_v16 = vpop.f32.mrb[13].mxu0  ;;  %v548_v17 = vpop.f32.mrb[13].mxu1 }
 0x10f   :  { %842 = vst [vmem:[%s1598_s4 + $0x48] sm:$0xff] %v778_v10  ;;  %874 = vst [vmem:[%s1598_s4 + $0x148] sm:$0xff] %v810_v11  ;;  %v646_v18 = vmul.f32 %v1267_v40, %v420_v16  ;;  %v678_v19 = vmul.f32 %v1267_v40, %v548_v17  ;;  %v1014_v20 = vpop.f32.mrb[14].mxu0  ;;  %v1046_v21 = vpop.f32.mrb[14].mxu1 }
 0x110   :  { %v719_v22 = vadd.f32 %v1272_v42, %v648_v14  ;;  %v751_v23 = vadd.f32 %v1272_v42, %v680_v15  ;;  %v649_v24 = vmul.f32 %v1014_v20, %v1267_v40  ;;  %v681_v25 = vmul.f32 %v1046_v21, %v1267_v40  ;;  %v423_v26 = vpop.f32.mrb[15].mxu0  ;;  %v551_v27 = vpop.f32.mrb[15].mxu1 }
 0x111   :  { %v717_v28 = vadd.f32 %v1272_v42, %v646_v18  ;;  %v749_v29 = vadd.f32 %v1272_v42, %v678_v19  ;;  %v647_v30 = vmul.f32 %v1267_v40, %v423_v26  ;;  %v679_v31 = vmul.f32 %v1267_v40, %v551_v27 }
 0x112   :  { %v783_v32 = vmax.f32 %v719_v22, 0.0  ;;  %v815_v33 = vmax.f32 %v751_v23, 0.0  ;;  %v720_v34 = vadd.f32 %v1272_v42, %v649_v24  ;;  %v752_v35 = vadd.f32 %v1272_v42, %v681_v25 }
 0x113   :  { %v781_v36 = vmax.f32 %v717_v28, 0.0  ;;  %v813_v37 = vmax.f32 %v749_v29, 0.0  ;;  %v718_v38 = vadd.f32 %v1272_v42, %v647_v30  ;;  %v750_v39 = vadd.f32 %v1272_v42, %v679_v31 }
 0x114   :  { %847 = vst [vmem:[%s1598_s4 + $0x70] sm:$0xff] %v783_v32  ;;  %879 = vst [vmem:[%s1598_s4 + $0x170] sm:$0xff] %v815_v33  ;;  %v784_v41 = vmax.f32 %v720_v34, 0.0  ;;  %v816_v43 = vmax.f32 %v752_v35, 0.0 }
 0x115   :  { %845 = vst [vmem:[%s1598_s4 + $0x60] sm:$0xff] %v781_v36  ;;  %877 = vst [vmem:[%s1598_s4 + $0x160] sm:$0xff] %v813_v37  ;;  %v782_v44 = vmax.f32 %v718_v38, 0.0  ;;  %v814_v45 = vmax.f32 %v750_v39, 0.0  ;;  %v1017_v46 = vpop.f32.mrb[16].mxu0  ;;  %v1049_v47 = vpop.f32.mrb[16].mxu1 }
 0x116   :  { %848 = vst [vmem:[%s1598_s4 + $0x78] sm:$0xff] %v784_v41  ;;  %880 = vst [vmem:[%s1598_s4 + $0x178] sm:$0xff] %v816_v43  ;;  %v652_v48 = vmul.f32 %v1017_v46, %v1267_v40  ;;  %v684_v49 = vmul.f32 %v1049_v47, %v1267_v40  ;;  %v436_v50 = vpop.f32.mrb[17].mxu0  ;;  %v564_v51 = vpop.f32.mrb[17].mxu1 }
 0x117   :  { %846 = vst [vmem:[%s1598_s4 + $0x68] sm:$0xff] %v782_v44  ;;  %878 = vst [vmem:[%s1598_s4 + $0x168] sm:$0xff] %v814_v45  ;;  %v650_v52 = vmul.f32 %v1267_v40, %v436_v50  ;;  %v682_v53 = vmul.f32 %v1267_v40, %v564_v51  ;;  %v1018_v54 = vpop.f32.mrb[18].mxu0  ;;  %v1050_v55 = vpop.f32.mrb[18].mxu1 }
 0x118   :  { %v723_v56 = vadd.f32 %v1272_v42, %v652_v48  ;;  %v755_v57 = vadd.f32 %v1272_v42, %v684_v49  ;;  %v653_v58 = vmul.f32 %v1018_v54, %v1267_v40  ;;  %v685_v59 = vmul.f32 %v1050_v55, %v1267_v40  ;;  %v439_v60 = vpop.f32.mrb[19].mxu0  ;;  %v567_v61 = vpop.f32.mrb[19].mxu1 }
 0x119   :  { %v721_v62 = vadd.f32 %v1272_v42, %v650_v52  ;;  %v753_v63 = vadd.f32 %v1272_v42, %v682_v53  ;;  %v651_v0 = vmul.f32 %v1267_v40, %v439_v60  ;;  %v683_v1 = vmul.f32 %v1267_v40, %v567_v61 }
 0x11a   :  { %v787_v2 = vmax.f32 %v723_v56, 0.0  ;;  %v819_v3 = vmax.f32 %v755_v57, 0.0  ;;  %v724_v4 = vadd.f32 %v1272_v42, %v653_v58  ;;  %v756_v5 = vadd.f32 %v1272_v42, %v685_v59 }
 0x11b   :  { %v785_v6 = vmax.f32 %v721_v62, 0.0  ;;  %v817_v7 = vmax.f32 %v753_v63, 0.0  ;;  %v722_v8 = vadd.f32 %v1272_v42, %v651_v0  ;;  %v754_v9 = vadd.f32 %v1272_v42, %v683_v1 }
 0x11c   :  { %851 = vst [vmem:[%s1598_s4 + $0x90] sm:$0xff] %v787_v2  ;;  %883 = vst [vmem:[%s1598_s4 + $0x190] sm:$0xff] %v819_v3  ;;  %v788_v10 = vmax.f32 %v724_v4, 0.0  ;;  %v820_v11 = vmax.f32 %v756_v5, 0.0 }
 0x11d   :  { %849 = vst [vmem:[%s1598_s4 + $0x80] sm:$0xff] %v785_v6  ;;  %881 = vst [vmem:[%s1598_s4 + $0x180] sm:$0xff] %v817_v7  ;;  %v786_v12 = vmax.f32 %v722_v8, 0.0  ;;  %v818_v13 = vmax.f32 %v754_v9, 0.0  ;;  %v1021_v14 = vpop.f32.mrb[20].mxu0  ;;  %v1053_v15 = vpop.f32.mrb[20].mxu1 }
 0x11e   :  { %852 = vst [vmem:[%s1598_s4 + $0x98] sm:$0xff] %v788_v10  ;;  %884 = vst [vmem:[%s1598_s4 + $0x198] sm:$0xff] %v820_v11  ;;  %v656_v16 = vmul.f32 %v1021_v14, %v1267_v40  ;;  %v688_v17 = vmul.f32 %v1053_v15, %v1267_v40  ;;  %v452_v18 = vpop.f32.mrb[21].mxu0  ;;  %v580_v19 = vpop.f32.mrb[21].mxu1 }
 0x11f   :  { %850 = vst [vmem:[%s1598_s4 + $0x88] sm:$0xff] %v786_v12  ;;  %882 = vst [vmem:[%s1598_s4 + $0x188] sm:$0xff] %v818_v13  ;;  %v654_v20 = vmul.f32 %v1267_v40, %v452_v18  ;;  %v686_v21 = vmul.f32 %v1267_v40, %v580_v19  ;;  %v1022_v22 = vpop.f32.mrb[22].mxu0  ;;  %v1054_v23 = vpop.f32.mrb[22].mxu1 }
 0x120   :  { %v727_v24 = vadd.f32 %v1272_v42, %v656_v16  ;;  %v759_v25 = vadd.f32 %v1272_v42, %v688_v17  ;;  %v657_v26 = vmul.f32 %v1022_v22, %v1267_v40  ;;  %v689_v27 = vmul.f32 %v1054_v23, %v1267_v40  ;;  %v455_v28 = vpop.f32.mrb[23].mxu0  ;;  %v583_v29 = vpop.f32.mrb[23].mxu1 }
 0x121   :  { %v725_v30 = vadd.f32 %v1272_v42, %v654_v20  ;;  %v757_v31 = vadd.f32 %v1272_v42, %v686_v21  ;;  %v655_v32 = vmul.f32 %v1267_v40, %v455_v28  ;;  %v687_v33 = vmul.f32 %v1267_v40, %v583_v29 }
 0x122   :  { %v791_v34 = vmax.f32 %v727_v24, 0.0  ;;  %v823_v35 = vmax.f32 %v759_v25, 0.0  ;;  %v728_v36 = vadd.f32 %v1272_v42, %v657_v26  ;;  %v760_v37 = vadd.f32 %v1272_v42, %v689_v27 }
 0x123   :  { %v789_v38 = vmax.f32 %v725_v30, 0.0  ;;  %v821_v39 = vmax.f32 %v757_v31, 0.0  ;;  %v726_v41 = vadd.f32 %v1272_v42, %v655_v32  ;;  %v758_v43 = vadd.f32 %v1272_v42, %v687_v33 }
 0x124   :  { %855 = vst [vmem:[%s1598_s4 + $0xb0] sm:$0xff] %v791_v34  ;;  %887 = vst [vmem:[%s1598_s4 + $0x1b0] sm:$0xff] %v823_v35  ;;  %v792_v44 = vmax.f32 %v728_v36, 0.0  ;;  %v824_v45 = vmax.f32 %v760_v37, 0.0 }
 0x125   :  { %853 = vst [vmem:[%s1598_s4 + $0xa0] sm:$0xff] %v789_v38  ;;  %885 = vst [vmem:[%s1598_s4 + $0x1a0] sm:$0xff] %v821_v39  ;;  %v790_v46 = vmax.f32 %v726_v41, 0.0  ;;  %v822_v47 = vmax.f32 %v758_v43, 0.0  ;;  %v1025_v48 = vpop.f32.mrb[24].mxu0  ;;  %v1057_v49 = vpop.f32.mrb[24].mxu1 }
 0x126   :  { %856 = vst [vmem:[%s1598_s4 + $0xb8] sm:$0xff] %v792_v44  ;;  %888 = vst [vmem:[%s1598_s4 + $0x1b8] sm:$0xff] %v824_v45  ;;  %v660_v50 = vmul.f32 %v1025_v48, %v1267_v40  ;;  %v692_v51 = vmul.f32 %v1057_v49, %v1267_v40  ;;  %v468_v52 = vpop.f32.mrb[25].mxu0  ;;  %v596_v53 = vpop.f32.mrb[25].mxu1 }
 0x127   :  { %854 = vst [vmem:[%s1598_s4 + $0xa8] sm:$0xff] %v790_v46  ;;  %886 = vst [vmem:[%s1598_s4 + $0x1a8] sm:$0xff] %v822_v47  ;;  %v658_v54 = vmul.f32 %v1267_v40, %v468_v52  ;;  %v690_v55 = vmul.f32 %v1267_v40, %v596_v53  ;;  %v1026_v56 = vpop.f32.mrb[26].mxu0  ;;  %v1058_v57 = vpop.f32.mrb[26].mxu1 }
 0x128   :  { %v731_v58 = vadd.f32 %v1272_v42, %v660_v50  ;;  %v763_v59 = vadd.f32 %v1272_v42, %v692_v51  ;;  %v661_v60 = vmul.f32 %v1026_v56, %v1267_v40  ;;  %v693_v61 = vmul.f32 %v1058_v57, %v1267_v40  ;;  %v471_v62 = vpop.f32.mrb[27].mxu0  ;;  %v599_v63 = vpop.f32.mrb[27].mxu1 }
 0x129   :  { %v729_v0 = vadd.f32 %v1272_v42, %v658_v54  ;;  %v761_v1 = vadd.f32 %v1272_v42, %v690_v55  ;;  %v659_v2 = vmul.f32 %v1267_v40, %v471_v62  ;;  %v691_v3 = vmul.f32 %v1267_v40, %v599_v63 }
 0x12a   :  { %v795_v4 = vmax.f32 %v731_v58, 0.0  ;;  %v827_v5 = vmax.f32 %v763_v59, 0.0  ;;  %v732_v6 = vadd.f32 %v1272_v42, %v661_v60  ;;  %v764_v7 = vadd.f32 %v1272_v42, %v693_v61 }
 0x12b   :  { %v793_v8 = vmax.f32 %v729_v0, 0.0  ;;  %v825_v9 = vmax.f32 %v761_v1, 0.0  ;;  %v730_v10 = vadd.f32 %v1272_v42, %v659_v2  ;;  %v762_v11 = vadd.f32 %v1272_v42, %v691_v3 }
 0x12c   :  { %859 = vst [vmem:[%s1598_s4 + $0xd0] sm:$0xff] %v795_v4  ;;  %891 = vst [vmem:[%s1598_s4 + $0x1d0] sm:$0xff] %v827_v5  ;;  %v796_v12 = vmax.f32 %v732_v6, 0.0  ;;  %v828_v13 = vmax.f32 %v764_v7, 0.0 }
 0x12d   :  { %857 = vst [vmem:[%s1598_s4 + $0xc0] sm:$0xff] %v793_v8  ;;  %889 = vst [vmem:[%s1598_s4 + $0x1c0] sm:$0xff] %v825_v9  ;;  %v794_v14 = vmax.f32 %v730_v10, 0.0  ;;  %v826_v15 = vmax.f32 %v762_v11, 0.0  ;;  %v1029_v16 = vpop.f32.mrb[28].mxu0  ;;  %v1061_v17 = vpop.f32.mrb[28].mxu1 }
 0x12e   :  { %860 = vst [vmem:[%s1598_s4 + $0xd8] sm:$0xff] %v796_v12  ;;  %892 = vst [vmem:[%s1598_s4 + $0x1d8] sm:$0xff] %v828_v13  ;;  %v664_v18 = vmul.f32 %v1029_v16, %v1267_v40  ;;  %v696_v19 = vmul.f32 %v1061_v17, %v1267_v40  ;;  %v484_v20 = vpop.f32.mrb[29].mxu0  ;;  %v612_v21 = vpop.f32.mrb[29].mxu1 }
 0x12f   :  { %858 = vst [vmem:[%s1598_s4 + $0xc8] sm:$0xff] %v794_v14  ;;  %890 = vst [vmem:[%s1598_s4 + $0x1c8] sm:$0xff] %v826_v15  ;;  %v662_v22 = vmul.f32 %v1267_v40, %v484_v20  ;;  %v694_v23 = vmul.f32 %v1267_v40, %v612_v21  ;;  %v1030_v24 = vpop.f32.mrb[30].mxu0  ;;  %v1062_v25 = vpop.f32.mrb[30].mxu1 }
 0x130   :  { %v735_v26 = vadd.f32 %v1272_v42, %v664_v18  ;;  %v767_v27 = vadd.f32 %v1272_v42, %v696_v19  ;;  %v665_v28 = vmul.f32 %v1030_v24, %v1267_v40  ;;  %v697_v29 = vmul.f32 %v1062_v25, %v1267_v40  ;;  %v487_v30 = vpop.f32.mrb[31].mxu0  ;;  %v615_v31 = vpop.f32.mrb[31].mxu1 }
 0x131   :  { %v733_v32 = vadd.f32 %v1272_v42, %v662_v22  ;;  %v765_v33 = vadd.f32 %v1272_v42, %v694_v23  ;;  %v663_v34 = vmul.f32 %v1267_v40, %v487_v30  ;;  %v695_v35 = vmul.f32 %v1267_v40, %v615_v31 }
 0x132   :  { %v799_v36 = vmax.f32 %v735_v26, 0.0  ;;  %v831_v37 = vmax.f32 %v767_v27, 0.0  ;;  %v736_v38 = vadd.f32 %v1272_v42, %v665_v28  ;;  %v768_v39 = vadd.f32 %v1272_v42, %v697_v29 }
 0x133   :  { %v797_v41 = vmax.f32 %v733_v32, 0.0  ;;  %v829_v43 = vmax.f32 %v765_v33, 0.0  ;;  %v734_v44 = vadd.f32 %v1272_v42, %v663_v34  ;;  %v766_v45 = vadd.f32 %v1272_v42, %v695_v35 }
 0x134   :  { %863 = vst [vmem:[%s1598_s4 + $0xf0] sm:$0xff] %v799_v36  ;;  %895 = vst [vmem:[%s1598_s4 + $0x1f0] sm:$0xff] %v831_v37  ;;  %v800_v40 = vmax.f32 %v736_v38, 0.0  ;;  %v832_v46 = vmax.f32 %v768_v39, 0.0 }
 0x135   :  { %861 = vst [vmem:[%s1598_s4 + $0xe0] sm:$0xff] %v797_v41  ;;  %893 = vst [vmem:[%s1598_s4 + $0x1e0] sm:$0xff] %v829_v43  ;;  %v798_v47 = vmax.f32 %v734_v44, 0.0  ;;  %v830_v42 = vmax.f32 %v766_v45, 0.0 }
 0x136   :  { %864 = vst [vmem:[%s1598_s4 + $0xf8] sm:$0xff] %v800_v40  ;;  %896 = vst [vmem:[%s1598_s4 + $0x1f8] sm:$0xff] %v832_v46 }
 0x137   :  { %862 = vst [vmem:[%s1598_s4 + $0xe8] sm:$0xff] %v798_v47  ;;  %894 = vst [vmem:[%s1598_s4 + $0x1e8] sm:$0xff] %v830_v42 }

</bundles_post_ra>
